<compile_context>
chip_gen: v5e
topology: v5e:2x2
jax: 0.10.0
libtpu: 0.0.40
codegen_flags: <defaults>
</compile_context>

<pallas_src>
import math
from functools import partial

import numpy as np
import jax
import jax.numpy as jnp
from jax import lax
from jax.experimental import pallas as pl
from jax.experimental.pallas import tpu as pltpu


# -----------------------------------------------------------------------------
# Tiling helpers
# -----------------------------------------------------------------------------
def _pick_rows_tile(m):
    """Largest row-tile (<=512) dividing m, leaving >=2 grid steps when m>=16
    (so both v7x TensorCores get work).  No padding / trailing slice needed."""
    if m < 16:
        return m
    for cand in (512, 256, 128, 64, 32, 16, 8):
        if cand * 2 <= m and m % cand == 0:
            return cand
    return m


# -----------------------------------------------------------------------------
# Pallas kernels
# -----------------------------------------------------------------------------
def _conv1x1_kernel(with_stats, x_ref, w_ref, b_ref, o_ref, *stat_refs):
    """Row-tiled conv for kD=kH=1 (1x1x1 / (1,1,3) via Toeplitz weight)."""
    y = jnp.dot(x_ref[0], w_ref[0], preferred_element_type=jnp.float32) + b_ref[...]
    o_ref[0] = y.astype(o_ref.dtype)
    if with_stats:
        stat_refs[0][0, 0] = jnp.sum(y, axis=0, keepdims=True)
        stat_refs[1][0, 0] = jnp.sum(y * y, axis=0, keepdims=True)


def _conv_plane_kernel(k, O2, with_stats, *refs):
    """Per-D-plane conv for kD=kH=k (3): k shifted plane inputs (D taps),
    static row slices for the H taps, W taps folded into the Toeplitz weight."""
    xs = refs[:k]
    w_ref, b_ref, o_ref = refs[k], refs[k + 1], refs[k + 2]
    L = o_ref.shape[-1]
    acc = jnp.zeros((O2, L), jnp.float32)
    for a in range(k):
        xa = xs[a][0, 0]                       # (H + 2p, W*Cin) bf16
        for b in range(k):
            tap = xa[b:b + O2, :]              # (H, W*Cin)
            acc = acc + jnp.dot(tap, w_ref[a * k + b],
                                preferred_element_type=jnp.float32)
    y = acc + b_ref[...]
    o_ref[0, 0] = y.astype(o_ref.dtype)
    if with_stats:
        refs[k + 3][0, 0] = jnp.sum(y, axis=0, keepdims=True)
        refs[k + 4][0, 0] = jnp.sum(y * y, axis=0, keepdims=True)


def _mm_bias_kernel(a_ref, w_ref, b_ref, o_ref):
    o_ref[...] = (jnp.dot(a_ref[...], w_ref[...],
                          preferred_element_type=jnp.float32)
                  + b_ref[...]).astype(o_ref.dtype)


def _affine_relu_kernel(y_ref, s_ref, t_ref, o_ref):
    o_ref[...] = jnp.maximum(
        y_ref[...].astype(jnp.float32) * s_ref[...] + t_ref[...], 0.0
    ).astype(o_ref.dtype)


def _combine3_kernel(x_ref, y1_ref, y2_ref, y3_ref, s_ref, t_ref, o_ref):
    """out = x + sum_i relu(y_i * s_i + t_i)   (alpha folded into s_i/t_i)."""
    acc = x_ref[...].astype(jnp.float32)
    for i, yr in enumerate((y1_ref, y2_ref, y3_ref)):
        acc = acc + jnp.maximum(
            yr[...].astype(jnp.float32) * s_ref[i:i + 1, :] + t_ref[i:i + 1, :],
            0.0)
    o_ref[...] = acc.astype(o_ref.dtype)


# -----------------------------------------------------------------------------
# Conv wrappers
# -----------------------------------------------------------------------------
@partial(jax.jit, static_argnames=("with_stats",))
def conv_toep(x, wt, bt, *, with_stats=False):
    """Stride-1 Conv3d using a pre-expanded Toeplitz weight.

    x:  (N, D, H, W, Cin)  any float dtype
    wt: (kD*kH, W*Cin, W*Cout) bf16   (W / zero-pad along W folded in)
    bt: (1, W*Cout) f32
    Returns bf16 (N, D, H, W, Cout) [+ per-channel sum / sumsq if with_stats].
    """
    N, D1, D2, D3, Cin = x.shape
    T, K, L = wt.shape
    assert K == D3 * Cin, (K, D3, Cin)
    Cout = L // D3
    k = int(round(math.sqrt(T)))
    assert k * k == T and k in (1, 3)
    xb = x.astype(jnp.bfloat16)
    cparams = pltpu.CompilerParams(dimension_semantics=("parallel", "parallel"))

    if k == 1:
        M2 = D1 * D2
        tr = _pick_rows_tile(M2)
        G = M2 // tr
        xf = xb.reshape(N, M2, K)
        out_specs = [pl.BlockSpec((1, tr, L), lambda n, j: (n, j, 0))]
        out_shape = [jax.ShapeDtypeStruct((N, M2, L), jnp.bfloat16)]
        if with_stats:
            out_specs += [pl.BlockSpec((1, 1, 1, L), lambda n, j: (n, j, 0, 0))] * 2
            out_shape += [jax.ShapeDtypeStruct((N, G, 1, L), jnp.float32)] * 2
        res = pl.pallas_call(
            partial(_conv1x1_kernel, with_stats),
            grid=(N, G),
            in_specs=[pl.BlockSpec((1, tr, K), lambda n, j: (n, j, 0)),
                      pl.BlockSpec((1, K, L), lambda n, j: (0, 0, 0)),
                      pl.BlockSpec((1, L), lambda n, j: (0, 0))],
            out_specs=tuple(out_specs) if with_stats else out_specs[0],
            out_shape=tuple(out_shape) if with_stats else out_shape[0],
            compiler_params=cparams,
        )(xf, wt, bt)
    else:
        p = (k - 1) // 2
        xp = jnp.pad(xb, ((0, 0), (p, p), (p, p), (0, 0), (0, 0)))
        D1p, D2p = D1 + 2 * p, D2 + 2 * p
        xf = xp.reshape(N, D1p, D2p, K)
        in_specs = [pl.BlockSpec((1, 1, D2p, K), lambda n, i, a=a: (n, i + a, 0, 0))
                    for a in range(k)]
        in_specs += [pl.BlockSpec((T, K, L), lambda n, i: (0, 0, 0)),
                     pl.BlockSpec((1, L), lambda n, i: (0, 0))]
        out_specs = [pl.BlockSpec((1, 1, D2, L), lambda n, i: (n, i, 0, 0))]
        out_shape = [jax.ShapeDtypeStruct((N, D1, D2, L), jnp.bfloat16)]
        if with_stats:
            out_specs += [pl.BlockSpec((1, 1, 1, L), lambda n, i: (n, i, 0, 0))] * 2
            out_shape += [jax.ShapeDtypeStruct((N, D1, 1, L), jnp.float32)] * 2
        res = pl.pallas_call(
            partial(_conv_plane_kernel, k, D2, with_stats),
            grid=(N, D1),
            in_specs=in_specs,
            out_specs=tuple(out_specs) if with_stats else out_specs[0],
            out_shape=tuple(out_shape) if with_stats else out_shape[0],
            compiler_params=cparams,
        )(*([xf] * k), wt, bt)

    if with_stats:
        y, s1p, s2p = res
        ssum = s1p.reshape(-1, D3, Cout).sum(axis=(0, 1))
        ssq = s2p.reshape(-1, D3, Cout).sum(axis=(0, 1))
        return y.reshape(N, D1, D2, D3, Cout), ssum, ssq
    return res.reshape(N, D1, D2, D3, Cout)


@partial(jax.jit, static_argnames=("stride",))
def conv_im2col(x, w, b, stride):
    """Fallback for the single strided 5x5x1 stem conv (1-channel input).
    TODO(synk): this still materializes a (tiny) im2col matrix in HBM."""
    N, D1, D2, D3, Cin = x.shape
    Cout, _, k1, k2, k3 = w.shape
    s1, s2, s3 = stride
    p1, p2, p3 = (k1 - 1) // 2, (k2 - 1) // 2, (k3 - 1) // 2
    xb = jnp.pad(x.astype(jnp.bfloat16),
                 ((0, 0), (p1, p1), (p2, p2), (p3, p3), (0, 0)))
    O1 = (D1 + 2 * p1 - k1) // s1 + 1
    O2 = (D2 + 2 * p2 - k2) // s2 + 1
    O3 = (D3 + 2 * p3 - k3) // s3 + 1
    cols = []
    for a in range(k1):
        for bb in range(k2):
            for cc in range(k3):
                cols.append(xb[:, a:a + (O1 - 1) * s1 + 1:s1,
                               bb:bb + (O2 - 1) * s2 + 1:s2,
                               cc:cc + (O3 - 1) * s3 + 1:s3, :])
    A = jnp.concatenate(cols, axis=-1).reshape(N * O1 * O2 * O3,
                                               k1 * k2 * k3 * Cin)
    Wm = jnp.transpose(w, (2, 3, 4, 1, 0)).reshape(-1, Cout).astype(jnp.bfloat16)
    bf = b.astype(jnp.float32).reshape(1, Cout)
    M, K = A.shape
    tm = _pick_rows_tile(M)
    out = pl.pallas_call(
        _mm_bias_kernel,
        grid=(M // tm,),
        in_specs=[pl.BlockSpec((tm, K), lambda i: (i, 0)),
                  pl.BlockSpec((K, Cout), lambda i: (0, 0)),
                  pl.BlockSpec((1, Cout), lambda i: (0, 0))],
        out_specs=pl.BlockSpec((tm, Cout), lambda i: (i, 0)),
        out_shape=jax.ShapeDtypeStruct((M, Cout), jnp.bfloat16),
        compiler_params=pltpu.CompilerParams(dimension_semantics=("parallel",)),
    )(A, Wm, bf)
    return out.reshape(N, O1, O2, O3, Cout)


# -----------------------------------------------------------------------------
# Fused BN(+alpha)+ReLU(+residual) kernels
# -----------------------------------------------------------------------------
@jax.jit
def affine_relu(y5, scale, shift):
    """relu(y * scale + shift), per-channel, lane-dense (W folded into lanes)."""
    N, D1, D2, D3, C = y5.shape
    L, M2 = D3 * C, N * D1 * D2
    tm = _pick_rows_tile(M2)
    s = jnp.tile(scale.astype(jnp.float32), D3).reshape(1, L)
    t = jnp.tile(shift.astype(jnp.float32), D3).reshape(1, L)
    out = pl.pallas_call(
        _affine_relu_kernel,
        grid=(M2 // tm,),
        in_specs=[pl.BlockSpec((tm, L), lambda i: (i, 0)),
                  pl.BlockSpec((1, L), lambda i: (0, 0)),
                  pl.BlockSpec((1, L), lambda i: (0, 0))],
        out_specs=pl.BlockSpec((tm, L), lambda i: (i, 0)),
        out_shape=jax.ShapeDtypeStruct((M2, L), jnp.bfloat16),
        compiler_params=pltpu.CompilerParams(dimension_semantics=("parallel",)),
    )(y5.reshape(M2, L), s, t)
    return out.reshape(y5.shape)


@jax.jit
def combine3(x5, y1, y2, y3, s3, t3):
    """x + sum_i relu(y_i*s_i + t_i).  s3/t3: (3, C) with alpha already folded."""
    N, D1, D2, D3, C = x5.shape
    L, M2 = D3 * C, N * D1 * D2
    tm = _pick_rows_tile(M2)
    s = jnp.tile(s3.astype(jnp.float32), (1, D3))
    t = jnp.tile(t3.astype(jnp.float32), (1, D3))
    out = pl.pallas_call(
        _combine3_kernel,
        grid=(M2 // tm,),
        in_specs=[pl.BlockSpec((tm, L), lambda i: (i, 0))] * 4
        + [pl.BlockSpec((3, L), lambda i: (0, 0))] * 2,
        out_specs=pl.BlockSpec((tm, L), lambda i: (i, 0)),
        out_shape=jax.ShapeDtypeStruct((M2, L), jnp.bfloat16),
        compiler_params=pltpu.CompilerParams(dimension_semantics=("parallel",)),
    )(x5.reshape(M2, L), y1.reshape(M2, L), y2.reshape(M2, L),
      y3.reshape(M2, L), s, t)
    return out.reshape(x5.shape)


@jax.jit
def bn_affine(gamma, beta, ssum, ssq, count, alpha):
    """Training-mode BN scale/shift from fused conv stats, times alpha."""
    mean = ssum / count
    var = jnp.maximum(ssq / count - mean * mean, 0.0)
    scale = gamma * lax.rsqrt(var + 1e-5)
    shift = beta - mean * scale
    return alpha * scale, alpha * shift


# -----------------------------------------------------------------------------
# JAX glue
# -----------------------------------------------------------------------------
def maxpool_last(x):
    """MaxPool3d((1,1,2), stride (1,1,2)) over the last spatial dim."""
    N, D1, D2, D3, C = x.shape
    return x.reshape(N, D1, D2, D3 // 2, 2, C).max(axis=4)


def _upsample_axis_int(x, axis, s):
    """Integer-factor trilinear (align_corners=False) without gathers."""
    if s == 1:
        return x
    n = x.shape[axis]
    first = lax.slice_in_dim(x, 0, 1, axis=axis)
    last = lax.slice_in_dim(x, n - 1, n, axis=axis)
    xl = jnp.concatenate([first, lax.slice_in_dim(x, 0, n - 1, axis=axis)], axis=axis)
    xr = jnp.concatenate([lax.slice_in_dim(x, 1, n, axis=axis), last], axis=axis)
    phases = []
    for d in range(s):
        off = (d + 0.5) / s - 0.5
        if off < 0.0:
            phases.append((-off) * xl + (1.0 + off) * x)
        else:
            phases.append((1.0 - off) * x + off * xr)
    y = jnp.stack(phases, axis=axis + 1)
    shp = list(x.shape)
    shp[axis] = n * s
    return y.reshape(shp)


def _upsample_axis_gather(x, axis, out_len):
    in_len = x.shape[axis]
    if in_len == out_len:
        return x
    scale = in_len / out_len
    dst = jnp.arange(out_len, dtype=jnp.float32)
    src = jnp.clip((dst + 0.5) * scale - 0.5, 0.0, in_len - 1)
    i0 = jnp.floor(src).astype(jnp.int32)
    i1 = jnp.minimum(i0 + 1, in_len - 1)
    wgt = src - i0.astype(jnp.float32)
    shp = [1] * x.ndim
    shp[axis] = out_len
    wgt = wgt.reshape(shp)
    return jnp.take(x, i0, axis=axis) * (1.0 - wgt) + jnp.take(x, i1, axis=axis) * wgt


@partial(jax.jit, static_argnames=("out_size",))
def upsample_trilinear(x, out_size):
    for ax, o in zip((1, 2, 3), out_size):
        n = x.shape[ax]
        if o % n == 0:
            x = _upsample_axis_int(x, ax, o // n)
        else:
            x = _upsample_axis_gather(x, ax, o)
    return x


# -----------------------------------------------------------------------------
# Parameter construction (numpy, deterministic) + one-time weight preparation
# -----------------------------------------------------------------------------
_rng = np.random.default_rng(0)


def make_conv(cin, cout, k):
    fan_in = cin * k[0] * k[1] * k[2]
    bound = 1.0 / math.sqrt(fan_in)
    w = _rng.uniform(-bound, bound, size=(cout, cin) + tuple(k)).astype(np.float32)
    b = _rng.uniform(-bound, bound, size=(cout,)).astype(np.float32)
    return {"w": w, "b": b}


def make_bn(c):
    return {"gamma": jnp.ones((c,), jnp.float32),
            "beta": jnp.zeros((c,), jnp.float32)}


def _fold_chain(convs):
    """Fold trailing 1x1x1 convs into the preceding conv (exact)."""
    convs = list(convs)
    while len(convs) > 1 and convs[-1]["w"].shape[2:] == (1, 1, 1):
        c2 = convs.pop()
        c1 = convs.pop()
        W2 = c2["w"].reshape(c2["w"].shape[0], c2["w"].shape[1])
        w = np.einsum("om,mixyz->oixyz", W2, c1["w"]).astype(np.float32)
        b = (W2 @ c1["b"] + c2["b"]).astype(np.float32)
        convs.append({"w": w, "b": b})
    return convs


def prep_conv(cp, spatial):
    """Expand a stride-1 conv into a Toeplitz-along-W weight (done once)."""
    w, b = cp["w"], cp["b"]
    Cout, Cin, k1, k2, k3 = w.shape
    _, _, D3 = spatial
    assert k1 == k2 and k1 in (1, 3)
    p3 = (k3 - 1) // 2
    S = np.zeros((k3, D3, D3), np.float32)       # S[c, d3, o3]: tap selection
    for c in range(k3):
        for o3 in range(D3):
            d3 = o3 + c - p3
            if 0 <= d3 < D3:
                S[c, d3, o3] = 1.0
    w_r = np.transpose(w, (2, 3, 4, 1, 0)).reshape(k1 * k2, k3, Cin, Cout)
    wt = np.einsum("cdo,tcix->tdiox", S, w_r).reshape(k1 * k2, D3 * Cin, D3 * Cout)
    bt = np.tile(b.astype(np.float32), D3).reshape(1, D3 * Cout)
    return {"wt": jnp.asarray(wt, dtype=jnp.bfloat16),
            "bt": jnp.asarray(bt, dtype=jnp.float32)}


def init_encoder(in_c, out_c, s):
    def blk(chain, ch):
        return {"convs": [prep_conv(c, s) for c in _fold_chain(chain)],
                "bn": make_bn(ch)}
    return {
        "b2d": blk([make_conv(in_c, in_c, (3, 3, 1)),
                    make_conv(in_c, out_c, (1, 1, 1))], out_c),
        "b3d": blk([make_conv(in_c, in_c, (3, 3, 3)),
                    make_conv(in_c, out_c, (1, 1, 1))], out_c),
        "bp3d": blk([make_conv(in_c, in_c, (3, 3, 1)),
                     make_conv(in_c, out_c, (1, 1, 3))], out_c),
        "alpha": jnp.zeros((3,), jnp.float32),
    }


def init_decoder(in_c, s):
    c = in_c // 2
    def blk(chain):
        return {"convs": [prep_conv(cc, s) for cc in _fold_chain(chain)],
                "bn": make_bn(c)}
    return {
        "l2d": blk([make_conv(in_c, c, (1, 1, 1)), make_conv(c, c, (3, 3, 1)),
                    make_conv(c, c, (1, 1, 1))]),
        "r2d": blk([make_conv(c, c, (1, 1, 1)), make_conv(c, c, (1, 1, 1)),
                    make_conv(c, c, (1, 1, 1))]),
        "l3d": blk([make_conv(in_c, c, (1, 1, 1)), make_conv(c, c, (3, 3, 3)),
                    make_conv(c, c, (1, 1, 1))]),
        "r3d": blk([make_conv(c, c, (1, 1, 1)), make_conv(c, c, (3, 3, 3)),
                    make_conv(c, c, (1, 1, 1))]),
        "lp3d": blk([make_conv(in_c, c, (1, 1, 1)), make_conv(c, c, (3, 3, 1)),
                     make_conv(c, c, (1, 1, 1))]),
        "rp3d": blk([make_conv(c, c, (1, 1, 1)), make_conv(c, c, (1, 1, 3)),
                     make_conv(c, c, (1, 1, 1))]),
        "alpha": jnp.zeros((3,), jnp.float32),
    }


def init_network(out_channel, in_spatial=(32, 32, 32)):
    p = {}
    cmd1_a = make_conv(1, 24, (5, 5, 1))        # strided stem -> im2col fallback
    p["cmd1_a"] = {"w": jnp.asarray(cmd1_a["w"]), "b": jnp.asarray(cmd1_a["b"])}
    s = (in_spatial[0] // 2, in_spatial[1] // 2, in_spatial[2] // 2)
    p["cmd1_b"] = prep_conv(make_conv(24, 24, (1, 1, 1)), s)
    p["enc1"] = [init_encoder(24, 24, s) for _ in range(3)]

    def make_cmd(cin, cout, s):
        sa = (s[0] // 2, s[1] // 2, s[2])       # after exact pre-slice (stride 2,2,1)
        conv_a = prep_conv(make_conv(cin, cin, (1, 1, 1)), sa)
        sb = (sa[0], sa[1], sa[2] // 2)         # after maxpool (1,1,2)
        conv_b = prep_conv(make_conv(cin, cout, (1, 1, 1)), sb)
        return {"a": conv_a, "b": conv_b}, sb

    p["cmd2"], s = make_cmd(24, 30, s)
    p["enc2"] = [init_encoder(30, 30, s) for _ in range(4)]
    p["cmd3"], s = make_cmd(30, 32, s)
    p["enc3"] = [init_encoder(32, 32, s) for _ in range(6)]
    p["cmd4"], s = make_cmd(32, 64, s)
    p["enc4"] = [init_encoder(64, 64, s) for _ in range(3)]

    p["up1"] = prep_conv(make_conv(64, 32, (1, 1, 1)), s)
    s = (8, 8, 8)                               # fixed Upsample sizes (as in PyTorch)
    p["dec1"] = [init_decoder(32, s) for _ in range(3)]
    p["up2"] = prep_conv(make_conv(32, 30, (1, 1, 1)), s)
    s = (16, 16, 16)
    p["dec2"] = [init_decoder(30, s) for _ in range(3)]
    p["up3"] = prep_conv(make_conv(30, 24, (1, 1, 1)), s)
    s = (32, 32, 32)
    p["dec3"] = [init_decoder(24, s) for _ in range(3)]
    p["dec4"] = [init_decoder(24, s) for _ in range(3)]
    # TODO(synk): up4 has only `out_channel` output channels (<128 lanes); tiny layer.
    p["up4"] = prep_conv(make_conv(24, out_channel, (1, 1, 1)), s)
    return p


# -----------------------------------------------------------------------------
# Module forwards
# -----------------------------------------------------------------------------
def run_chain_stats(convs, x):
    for cp in convs[:-1]:
        x = conv_toep(x, cp["wt"], cp["bt"], with_stats=False)
    return conv_toep(x, convs[-1]["wt"], convs[-1]["bt"], with_stats=True)


def encoder_forward(p, x):
    a = jax.nn.softmax(p["alpha"])
    N, D1, D2, D3, _ = x.shape
    cnt = float(N * D1 * D2 * D3)
    ys, ss, ts = [], [], []
    for i, name in enumerate(("b2d", "b3d", "bp3d")):
        bp = p[name]
        y, s1, s2 = run_chain_stats(bp["convs"], x)
        sc, sh = bn_affine(bp["bn"]["gamma"], bp["bn"]["beta"], s1, s2, cnt, a[i])
        ys.append(y)
        ss.append(sc)
        ts.append(sh)
    # sum(alpha)==1  =>  a1*x1+a2*x2+a3*x3 == x + sum_i a_i*relu(bn_i(conv_i(x)))
    return combine3(x, ys[0], ys[1], ys[2], jnp.stack(ss), jnp.stack(ts))


def decoder_forward(p, x):
    a = jax.nn.softmax(p["alpha"])
    N, D1, D2, D3, C = x.shape
    c = C // 2
    cnt = float(N * D1 * D2 * D3)
    x1s, yrs, srs, trs = [], [], [], []
    for i, (ln, rn) in enumerate((("l2d", "r2d"), ("l3d", "r3d"), ("lp3d", "rp3d"))):
        lb, rb = p[ln], p[rn]
        yl, l1, l2 = run_chain_stats(lb["convs"], x)
        lsc, lsh = bn_affine(lb["bn"]["gamma"], lb["bn"]["beta"], l1, l2, cnt, 1.0)
        x1 = affine_relu(yl, lsc, lsh)
        x1s.append(x1)
        yr, r1, r2 = run_chain_stats(rb["convs"], x1)
        rsc, rsh = bn_affine(rb["bn"]["gamma"], rb["bn"]["beta"], r1, r2, cnt, a[i])
        yrs.append(yr)
        srs.append(rsc)
        trs.append(rsh)
    # left half: x[:c] + sum_i a_i * x1_i   (x1_i >= 0, so relu(a_i*x1_i) is exact)
    ones_c = jnp.ones((c,), jnp.float32)
    s_left = jnp.stack([a[0] * ones_c, a[1] * ones_c, a[2] * ones_c])
    t_left = jnp.zeros((3, c), jnp.float32)
    out_l = combine3(x[..., :c], x1s[0], x1s[1], x1s[2], s_left, t_left)
    out_r = combine3(x[..., c:], yrs[0], yrs[1], yrs[2],
                     jnp.stack(srs), jnp.stack(trs))
    return jnp.concatenate([out_l, out_r], axis=-1)


def run_cmd(cmdp, x):
    # Conv3d(C,C,1,stride=(2,2,1)) == exact spatial pre-slice + 1x1x1 conv.
    x = x[:, ::2, ::2, :, :]
    x = conv_toep(x, cmdp["a"]["wt"], cmdp["a"]["bt"], with_stats=False)
    x = maxpool_last(x)
    x = conv_toep(x, cmdp["b"]["wt"], cmdp["b"]["bt"], with_stats=False)
    return x


def network_forward(p, x_ncdhw):
    x = jnp.transpose(x_ncdhw, (0, 2, 3, 4, 1)).astype(jnp.float32)  # NDHWC
    x = conv_im2col(x, p["cmd1_a"]["w"], p["cmd1_a"]["b"], stride=(2, 2, 1))
    x = maxpool_last(x)
    x = conv_toep(x, p["cmd1_b"]["wt"], p["cmd1_b"]["bt"], with_stats=False)
    for e in p["enc1"]:
        x = encoder_forward(e, x)
    x = run_cmd(p["cmd2"], x)
    for e in p["enc2"]:
        x = encoder_forward(e, x)
    x = run_cmd(p["cmd3"], x)
    for e in p["enc3"]:
        x = encoder_forward(e, x)
    x = run_cmd(p["cmd4"], x)
    for e in p["enc4"]:
        x = encoder_forward(e, x)

    x = conv_toep(x, p["up1"]["wt"], p["up1"]["bt"], with_stats=False)
    x = upsample_trilinear(x, out_size=(8, 8, 8))
    for d in p["dec1"]:
        x = decoder_forward(d, x)
    x = conv_toep(x, p["up2"]["wt"], p["up2"]["bt"], with_stats=False)
    x = upsample_trilinear(x, out_size=(16, 16, 16))
    for d in p["dec2"]:
        x = decoder_forward(d, x)
    x = conv_toep(x, p["up3"]["wt"], p["up3"]["bt"], with_stats=False)
    x = upsample_trilinear(x, out_size=(32, 32, 32))
    for d in p["dec3"]:
        x = decoder_forward(d, x)
    for d in p["dec4"]:
        x = decoder_forward(d, x)
    x = conv_toep(x, p["up4"]["wt"], p["up4"]["bt"], with_stats=False)
    x = upsample_trilinear(x, out_size=(64, 64, 64))
    return jnp.transpose(x, (0, 4, 1, 2, 3)).astype(jnp.float32)      # NCDHW


# -----------------------------------------------------------------------------
if __name__ == "__main__":
    out_channel = 2
    params = init_network(out_channel, in_spatial=(32, 32, 32))

    # Input in PyTorch NCDHW layout: (batch=1, channels=1, D=32, H=32, W=32).
    x = jax.random.normal(jax.random.PRNGKey(0), (1, 1, 32, 32, 32), jnp.float32)

    out = network_forward(params, x)
    out = jax.block_until_ready(out)

    assert out.shape == (1, out_channel, 64, 64, 64), out.shape
    assert bool(jnp.isfinite(out).all()), "non-finite values in output"
    print("KERNEL_OK")
</pallas_src>

<mosaic_0001>
module attributes {stable_mosaic.version = 11 : i64} {
  func.func @_mm_bias_kernel(%arg0: i32, %arg1: memref<512x25xbf16, #tpu.memory_space<vmem>>, %arg2: memref<25x24xbf16, #tpu.memory_space<vmem>>, %arg3: memref<1x24xf32, #tpu.memory_space<vmem>>, %arg4: memref<512x24xbf16, #tpu.memory_space<vmem>>) attributes {dimension_semantics = [#tpu.dimension_semantics<parallel>], iteration_bounds = array<i64: 16>, scalar_prefetch = 0 : i64, scratch_operands = 0 : i64, tpu.core_type = #tpu.core_type<tc>, window_params = [{transform_indices = @transform_0, window_bounds = array<i64: 512, 25>}, {pipeline_mode = #tpu.pipeline_mode<synchronous>, transform_indices = @transform_1, window_bounds = array<i64: 25, 24>}, {pipeline_mode = #tpu.pipeline_mode<synchronous>, transform_indices = @transform_2, window_bounds = array<i64: 1, 24>}, {transform_indices = @transform_3, window_bounds = array<i64: 512, 24>}]} {
    %c0 = arith.constant 0 : index
    %c0_0 = arith.constant 0 : index
    %0 = vector.load %arg1[%c0, %c0_0] : memref<512x25xbf16, #tpu.memory_space<vmem>>, vector<512x25xbf16>
    %c0_1 = arith.constant 0 : index
    %c0_2 = arith.constant 0 : index
    %1 = vector.load %arg2[%c0_1, %c0_2] : memref<25x24xbf16, #tpu.memory_space<vmem>>, vector<25x24xbf16>
    %cst = arith.constant dense<0.000000e+00> : vector<512x24xf32>
    %2 = tpu.matmul %0, %1, %cst {dimension_numbers = #tpu.dot_dimension_numbers<[1], [0], [0], [1], [0, 0, 1, 1], [], []>} : vector<512x25xbf16>, vector<25x24xbf16>, vector<512x24xf32> -> vector<512x24xf32>
    %c0_3 = arith.constant 0 : index
    %c0_4 = arith.constant 0 : index
    %3 = vector.load %arg3[%c0_3, %c0_4] : memref<1x24xf32, #tpu.memory_space<vmem>>, vector<1x24xf32>
    %4 = vector.broadcast %3 : vector<1x24xf32> to vector<512x24xf32>
    %5 = arith.addf %2, %4 : vector<512x24xf32>
    %6 = arith.truncf %5 : vector<512x24xf32> to vector<512x24xbf16>
    %c0_5 = arith.constant 0 : index
    %c0_6 = arith.constant 0 : index
    %7 = vector.load %arg4[%c0_5, %c0_6] : memref<512x24xbf16, #tpu.memory_space<vmem>>, vector<512x24xbf16>
    tpu.vector_store %arg4[%c0_5, %c0_6], %6 {strides = array<i32>} : memref<512x24xbf16, #tpu.memory_space<vmem>>, vector<512x24xbf16>,
    return
  }
  func.func @transform_0(%arg0: i32) -> (i32, i32) {
    %c0_i32 = arith.constant 0 : i32
    %c0_i32_0 = arith.constant 0 : i32
    return %arg0, %c0_i32 : i32, i32
  }
  func.func @transform_1(%arg0: i32) -> (i32, i32) {
    %c0_i32 = arith.constant 0 : i32
    %c0_i32_0 = arith.constant 0 : i32
    %c0_i32_1 = arith.constant 0 : i32
    return %c0_i32, %c0_i32_0 : i32, i32
  }
  func.func @transform_2(%arg0: i32) -> (i32, i32) {
    %c0_i32 = arith.constant 0 : i32
    %c0_i32_0 = arith.constant 0 : i32
    %c0_i32_1 = arith.constant 0 : i32
    return %c0_i32, %c0_i32_0 : i32, i32
  }
  func.func @transform_3(%arg0: i32) -> (i32, i32) {
    %c0_i32 = arith.constant 0 : i32
    %c0_i32_0 = arith.constant 0 : i32
    return %arg0, %c0_i32 : i32, i32
  }
}

</mosaic_0001>

<bundles_post_ra>
// kernel: conv_im2col.1
= control target key start
LH: loop header
LB: loop body
LE: loop exit
PB: predicated region body
PF: predicated region fallthrough
CT: control target
= control target key end

     0   :  { %s1134_s12 = smov 0   ;;  %s1432_s0 = inlined_call_operand.vmem [shape: bf16[8192,25], index: 0, kind: input, shape index: {}]   ;;  %s1433_s1 = inlined_call_operand.vmem [shape: bf16[25,24], index: 1, kind: input, shape index: {}]   ;;  %s1434_s2 = inlined_call_operand.vmem [shape: f32[1,24], index: 2, kind: input, shape index: {}]   ;;  %s1435_s3 = inlined_call_operand.vmem [shape: bf16[8192,24], index: 3, kind: output, shape index: {}]  }
   0x1 LB: > { %s876_s13 = sadd.s32 4294967295, %s1111_s12   ;;  %p880_p0 = scmp.ge.s32.totalorder %s1111_s12, 1  ;;  %s1111_s12 = sphi %s1134_s12, %s13_s12  }
   0x2   : > { %p138_p1 = scmp.lt.s32.totalorder %s1111_s12, 17 }
   0x4   : > { %p139_p2 = pnand %p880_p0, %p138_p1 }
   0x5   : > { %s881_s18 = sshll.u32 (!%p139_p2), %s876_s13, 6 }
   0x6   : > { %142 = sbr.rel (%p139_p2) target bundleno = 283 (0x11b), region = 32  ;;  %p163_p3 = scmp.lt.s32.totalorder (!%p139_p2), %s881_s18, 1023 }
   0xb   : > { %v1019_v0 = vld [vmem:[%s1433_s1 + $0x8] sm:$0xf]  ;;  %v1088_v1 = vld [vmem:[%s1433_s1 + $0x8] sm:$0x10]  ;;  %vm515_vm0 = vcmask 1043456   ;;  %vm516_vm1 = vcmask 1044480  }
   0xc   : > { %v1020_v2 = vor.u32 %v1088_v1, %v1019_v0  ;;  %v1113_v3 = vmov 65535   ;;  %s1437_s18 = smov (!%p163_p3, %s881_s18), 1023  ;;  %v1087_v7 = vld [vmem:[%s1433_s1] sm:$0xff]  ;;  %vm418_vm2 = vcmask 203776   ;;  %vm755_vm3 = vcmask 191488  }
   0xd   : > { %v517_v4 = vsel %vm515_vm0, 4294967295, %v1113_v3  ;;  %s882_s21 = sshll.u32 %s1437_s18, 2  ;;  %v1228_v40 = vld [vmem:[%s1434_s2] ss:$0 sm:$0xff] }
   0xe   : > { %v518_v5 = vsel %vm516_vm1, %v517_v4, 0  ;;  %s1159_s24 = scalar_lea.vmem %s1432_s0, %s882_s21  ;;  %s1237_s29 = scalar_lea.vmem %s1435_s3, %s882_s21 }
   0xf   : > { %v520_v6 = vand.u32 %v1020_v2, %v518_v5  ;;  %v1055_v8 = vld [vmem:[%s1159_s24] sm:$0xff]  ;;  %v1056_v12 = vld [vmem:[%s1159_s24 + $0x8] sm:$0xff]  ;;  %v1057_v16 = vld [vmem:[%s1159_s24 + $0x10] sm:$0xff] }
  0x10   : > { %v1063_v9 = vld [vmem:[%s1159_s24 + $0x40] sm:$0xff]  ;;  %v1064_v13 = vld [vmem:[%s1159_s24 + $0x48] sm:$0xff]  ;;  %v1065_v17 = vld [vmem:[%s1159_s24 + $0x50] sm:$0xff] }
  0x11   : > { %528 = vmatpush.bf16.msra.mxu0 %v520_v6  ;;  %1089 = vmatpush.bf16.msra.mxu1 %v520_v6  ;;  %v1071_v10 = vld [vmem:[%s1159_s24 + $0x80] sm:$0xff]  ;;  %v1072_v14 = vld [vmem:[%s1159_s24 + $0x88] sm:$0xff]  ;;  %v1073_v18 = vld [vmem:[%s1159_s24 + $0x90] sm:$0xff] }
  0x12   : > { %1090 = vmatpush.bf16.msra.mxu2 %v520_v6  ;;  %1091 = vmatpush.bf16.msra.mxu3 %v520_v6  ;;  %v1079_v11 = vld [vmem:[%s1159_s24 + $0xc0] sm:$0xff]  ;;  %v1080_v15 = vld [vmem:[%s1159_s24 + $0xc8] sm:$0xff]  ;;  %v1081_v19 = vld [vmem:[%s1159_s24 + $0xd0] sm:$0xff] }
  0x13   : > { %v1058_v20 = vld [vmem:[%s1159_s24 + $0x18] sm:$0xff]  ;;  %v1059_v24 = vld [vmem:[%s1159_s24 + $0x20] sm:$0xff]  ;;  %v1060_v28 = vld [vmem:[%s1159_s24 + $0x28] sm:$0xff] }
  0x14   : > { %v1066_v21 = vld [vmem:[%s1159_s24 + $0x58] sm:$0xff]  ;;  %v1067_v25 = vld [vmem:[%s1159_s24 + $0x60] sm:$0xff]  ;;  %v1068_v29 = vld [vmem:[%s1159_s24 + $0x68] sm:$0xff] }
  0x15   : > { %529 = vmatpush.bf16.msra.mxu0 %v1087_v7  ;;  %1092 = vmatpush.bf16.msra.mxu1 %v1087_v7  ;;  %v1074_v22 = vld [vmem:[%s1159_s24 + $0x98] sm:$0xff]  ;;  %v1075_v26 = vld [vmem:[%s1159_s24 + $0xa0] sm:$0xff]  ;;  %v1076_v30 = vld [vmem:[%s1159_s24 + $0xa8] sm:$0xff] }
  0x16   : > { %1093 = vmatpush.bf16.msra.mxu2 %v1087_v7  ;;  %1094 = vmatpush.bf16.msra.mxu3 %v1087_v7  ;;  %v1082_v23 = vld [vmem:[%s1159_s24 + $0xd8] sm:$0xff]  ;;  %v1083_v27 = vld [vmem:[%s1159_s24 + $0xe0] sm:$0xff]  ;;  %v1084_v31 = vld [vmem:[%s1159_s24 + $0xe8] sm:$0xff] }
  0x17   : > { %v1061_v32 = vld [vmem:[%s1159_s24 + $0x30] sm:$0xff]  ;;  %v1062_v36 = vld [vmem:[%s1159_s24 + $0x38] sm:$0xff] }
  0x18   : > { %1021 = vmatmul.msk.bf16.vlgmr.msra.gmra.mxu0 %vm418_vm2, %v1055_v8  ;;  %1029 = vmatmul.msk.bf16.vlgmr.msra.gmra.mxu1 %vm418_vm2, %v1063_v9  ;;  %v1069_v33 = vld [vmem:[%s1159_s24 + $0x70] sm:$0xff]  ;;  %v1070_v37 = vld [vmem:[%s1159_s24 + $0x78] sm:$0xff] }
  0x19   : > { %1037 = vmatmul.msk.bf16.vlgmr.msra.gmra.mxu2 %vm418_vm2, %v1071_v10  ;;  %1045 = vmatmul.msk.bf16.vlgmr.msra.gmra.mxu3 %vm418_vm2, %v1079_v11  ;;  %v1077_v34 = vld [vmem:[%s1159_s24 + $0xb0] sm:$0xff]  ;;  %v1078_v38 = vld [vmem:[%s1159_s24 + $0xb8] sm:$0xff] }
  0x1a   : > { %v1085_v35 = vld [vmem:[%s1159_s24 + $0xf0] sm:$0xff]  ;;  %v1086_v39 = vld [vmem:[%s1159_s24 + $0xf8] sm:$0xff] }
  0x28   : > { %1022 = vmatmul.msk.bf16.gmra.mxu0 %vm418_vm2, %v1056_v12  ;;  %1030 = vmatmul.msk.bf16.gmra.mxu1 %vm418_vm2, %v1064_v13 }
  0x29   : > { %1038 = vmatmul.msk.bf16.gmra.mxu2 %vm418_vm2, %v1072_v14  ;;  %1046 = vmatmul.msk.bf16.gmra.mxu3 %vm418_vm2, %v1080_v15 }
  0x38   : > { %1023 = vmatmul.msk.bf16.gmra.mxu0 %vm418_vm2, %v1057_v16  ;;  %1031 = vmatmul.msk.bf16.gmra.mxu1 %vm418_vm2, %v1065_v17 }
  0x39   : > { %1039 = vmatmul.msk.bf16.gmra.mxu2 %vm418_vm2, %v1073_v18  ;;  %1047 = vmatmul.msk.bf16.gmra.mxu3 %vm418_vm2, %v1081_v19 }
  0x48   : > { %1024 = vmatmul.msk.bf16.gmra.mxu0 %vm418_vm2, %v1058_v20  ;;  %1032 = vmatmul.msk.bf16.gmra.mxu1 %vm418_vm2, %v1066_v21 }
  0x49   : > { %1040 = vmatmul.msk.bf16.gmra.mxu2 %vm418_vm2, %v1074_v22  ;;  %1048 = vmatmul.msk.bf16.gmra.mxu3 %vm418_vm2, %v1082_v23 }
  0x58   : > { %1025 = vmatmul.msk.bf16.gmra.mxu0 %vm418_vm2, %v1059_v24  ;;  %1033 = vmatmul.msk.bf16.gmra.mxu1 %vm418_vm2, %v1067_v25 }
  0x59   : > { %1041 = vmatmul.msk.bf16.gmra.mxu2 %vm418_vm2, %v1075_v26  ;;  %1049 = vmatmul.msk.bf16.gmra.mxu3 %vm418_vm2, %v1083_v27 }
  0x68   : > { %1026 = vmatmul.msk.bf16.gmra.mxu0 %vm418_vm2, %v1060_v28  ;;  %1034 = vmatmul.msk.bf16.gmra.mxu1 %vm418_vm2, %v1068_v29 }
  0x69   : > { %1042 = vmatmul.msk.bf16.gmra.mxu2 %vm418_vm2, %v1076_v30  ;;  %1050 = vmatmul.msk.bf16.gmra.mxu3 %vm418_vm2, %v1084_v31 }
  0x78   : > { %1027 = vmatmul.msk.bf16.gmra.mxu0 %vm418_vm2, %v1061_v32  ;;  %1035 = vmatmul.msk.bf16.gmra.mxu1 %vm418_vm2, %v1069_v33 }
  0x79   : > { %1043 = vmatmul.msk.bf16.gmra.mxu2 %vm418_vm2, %v1077_v34  ;;  %1051 = vmatmul.msk.bf16.gmra.mxu3 %vm418_vm2, %v1085_v35 }
  0x88   : > { %1028 = vmatmul.msk.bf16.gmra.mxu0 %vm418_vm2, %v1062_v36  ;;  %1036 = vmatmul.msk.bf16.gmra.mxu1 %vm418_vm2, %v1070_v37 }
  0x89   : > { %1044 = vmatmul.msk.bf16.gmra.mxu2 %vm418_vm2, %v1078_v38  ;;  %1052 = vmatmul.msk.bf16.gmra.mxu3 %vm418_vm2, %v1086_v39 }
  0x95   : > { %v531_v41 = vpop.f32.mrf.mxu0  ;;  %v571_v42 = vpop.f32.mrf.mxu1 }
  0x96   : > { %v532_v43 = vadd.f32 %v1228_v40, %v531_v41  ;;  %v572_v44 = vadd.f32 %v1228_v40, %v571_v42 }
  0x98   : > { %v691_v45 = vpack.c.bf16 %v532_v43, %v532_v43  ;;  %v707_v46 = vpack.c.bf16 %v572_v44, %v572_v44 }
  0x9a   : > { %756 = vst.msk [vmem:[%s1237_s29] sm:$0xf] %vm755_vm3, %v691_v45 }
  0x9b   : > { %772 = vst.msk [vmem:[%s1237_s29 + $0x40] sm:$0xf] %vm755_vm3, %v707_v46 }
  0x9c   : > { %v611_v47 = vpop.f32.mrf.mxu2  ;;  %v651_v48 = vpop.f32.mrf.mxu3 }
  0x9d   : > { %v612_v49 = vadd.f32 %v1228_v40, %v611_v47  ;;  %v652_v50 = vadd.f32 %v1228_v40, %v651_v48  ;;  %v533_v51 = vpop.f32.mrf.mxu0  ;;  %v573_v52 = vpop.f32.mrf.mxu1 }
  0x9e   : > { %v534_v53 = vadd.f32 %v1228_v40, %v533_v51  ;;  %v574_v54 = vadd.f32 %v1228_v40, %v573_v52 }
  0x9f   : > { %v723_v55 = vpack.c.bf16 %v612_v49, %v612_v49  ;;  %v739_v56 = vpack.c.bf16 %v652_v50, %v652_v50 }
  0xa0   : > { %v692_v57 = vpack.c.bf16 %v534_v53, %v534_v53  ;;  %v708_v58 = vpack.c.bf16 %v574_v54, %v574_v54 }
  0xa1   : > { %788 = vst.msk [vmem:[%s1237_s29 + $0x80] sm:$0xf] %vm755_vm3, %v723_v55 }
  0xa2   : > { %804 = vst.msk [vmem:[%s1237_s29 + $0xc0] sm:$0xf] %vm755_vm3, %v739_v56 }
  0xa3   : > { %757 = vst.msk [vmem:[%s1237_s29 + $0x4] sm:$0xf] %vm755_vm3, %v692_v57 }
  0xa4   : > { %773 = vst.msk [vmem:[%s1237_s29 + $0x44] sm:$0xf] %vm755_vm3, %v708_v58  ;;  %v613_v59 = vpop.f32.mrf.mxu2  ;;  %v653_v60 = vpop.f32.mrf.mxu3 }
  0xa5   : > { %v614_v61 = vadd.f32 %v1228_v40, %v613_v59  ;;  %v654_v62 = vadd.f32 %v1228_v40, %v653_v60  ;;  %v536_v63 = vpop.f32.mrf.mxu0  ;;  %v576_v0 = vpop.f32.mrf.mxu1 }
  0xa6   : > { %v537_v1 = vadd.f32 %v1228_v40, %v536_v63  ;;  %v577_v2 = vadd.f32 %v1228_v40, %v576_v0 }
  0xa7   : > { %v724_v3 = vpack.c.bf16 %v614_v61, %v614_v61  ;;  %v740_v4 = vpack.c.bf16 %v654_v62, %v654_v62 }
  0xa8   : > { %v693_v5 = vpack.c.bf16 %v537_v1, %v537_v1  ;;  %v709_v6 = vpack.c.bf16 %v577_v2, %v577_v2 }
  0xa9   : > { %789 = vst.msk [vmem:[%s1237_s29 + $0x84] sm:$0xf] %vm755_vm3, %v724_v3 }
  0xaa   : > { %805 = vst.msk [vmem:[%s1237_s29 + $0xc4] sm:$0xf] %vm755_vm3, %v740_v4 }
  0xab   : > { %758 = vst.msk [vmem:[%s1237_s29 + $0x8] sm:$0xf] %vm755_vm3, %v693_v5 }
  0xac   : > { %774 = vst.msk [vmem:[%s1237_s29 + $0x48] sm:$0xf] %vm755_vm3, %v709_v6  ;;  %v616_v7 = vpop.f32.mrf.mxu2  ;;  %v656_v8 = vpop.f32.mrf.mxu3 }
  0xad   : > { %v617_v9 = vadd.f32 %v1228_v40, %v616_v7  ;;  %v657_v10 = vadd.f32 %v1228_v40, %v656_v8  ;;  %v538_v11 = vpop.f32.mrf.mxu0  ;;  %v578_v12 = vpop.f32.mrf.mxu1 }
  0xae   : > { %v539_v13 = vadd.f32 %v1228_v40, %v538_v11  ;;  %v579_v14 = vadd.f32 %v1228_v40, %v578_v12 }
  0xaf   : > { %v725_v15 = vpack.c.bf16 %v617_v9, %v617_v9  ;;  %v741_v16 = vpack.c.bf16 %v657_v10, %v657_v10 }
  0xb0   : > { %v694_v17 = vpack.c.bf16 %v539_v13, %v539_v13  ;;  %v710_v18 = vpack.c.bf16 %v579_v14, %v579_v14 }
  0xb1   : > { %790 = vst.msk [vmem:[%s1237_s29 + $0x88] sm:$0xf] %vm755_vm3, %v725_v15 }
  0xb2   : > { %806 = vst.msk [vmem:[%s1237_s29 + $0xc8] sm:$0xf] %vm755_vm3, %v741_v16 }
  0xb3   : > { %759 = vst.msk [vmem:[%s1237_s29 + $0xc] sm:$0xf] %vm755_vm3, %v694_v17 }
  0xb4   : > { %775 = vst.msk [vmem:[%s1237_s29 + $0x4c] sm:$0xf] %vm755_vm3, %v710_v18  ;;  %v618_v19 = vpop.f32.mrf.mxu2  ;;  %v658_v20 = vpop.f32.mrf.mxu3 }
  0xb5   : > { %v619_v21 = vadd.f32 %v1228_v40, %v618_v19  ;;  %v659_v22 = vadd.f32 %v1228_v40, %v658_v20  ;;  %v541_v23 = vpop.f32.mrf.mxu0  ;;  %v581_v24 = vpop.f32.mrf.mxu1 }
  0xb6   : > { %v542_v25 = vadd.f32 %v1228_v40, %v541_v23  ;;  %v582_v26 = vadd.f32 %v1228_v40, %v581_v24 }
  0xb7   : > { %v726_v27 = vpack.c.bf16 %v619_v21, %v619_v21  ;;  %v742_v28 = vpack.c.bf16 %v659_v22, %v659_v22 }
  0xb8   : > { %v695_v29 = vpack.c.bf16 %v542_v25, %v542_v25  ;;  %v711_v30 = vpack.c.bf16 %v582_v26, %v582_v26 }
  0xb9   : > { %791 = vst.msk [vmem:[%s1237_s29 + $0x8c] sm:$0xf] %vm755_vm3, %v726_v27 }
  0xba   : > { %807 = vst.msk [vmem:[%s1237_s29 + $0xcc] sm:$0xf] %vm755_vm3, %v742_v28 }
  0xbb   : > { %760 = vst.msk [vmem:[%s1237_s29 + $0x10] sm:$0xf] %vm755_vm3, %v695_v29 }
  0xbc   : > { %776 = vst.msk [vmem:[%s1237_s29 + $0x50] sm:$0xf] %vm755_vm3, %v711_v30  ;;  %v621_v31 = vpop.f32.mrf.mxu2  ;;  %v661_v32 = vpop.f32.mrf.mxu3 }
  0xbd   : > { %v622_v33 = vadd.f32 %v1228_v40, %v621_v31  ;;  %v662_v34 = vadd.f32 %v1228_v40, %v661_v32  ;;  %v543_v35 = vpop.f32.mrf.mxu0  ;;  %v583_v36 = vpop.f32.mrf.mxu1 }
  0xbe   : > { %v544_v37 = vadd.f32 %v1228_v40, %v543_v35  ;;  %v584_v38 = vadd.f32 %v1228_v40, %v583_v36 }
  0xbf   : > { %v727_v39 = vpack.c.bf16 %v622_v33, %v622_v33  ;;  %v743_v41 = vpack.c.bf16 %v662_v34, %v662_v34 }
  0xc0   : > { %v696_v42 = vpack.c.bf16 %v544_v37, %v544_v37  ;;  %v712_v43 = vpack.c.bf16 %v584_v38, %v584_v38 }
  0xc1   : > { %792 = vst.msk [vmem:[%s1237_s29 + $0x90] sm:$0xf] %vm755_vm3, %v727_v39 }
  0xc2   : > { %808 = vst.msk [vmem:[%s1237_s29 + $0xd0] sm:$0xf] %vm755_vm3, %v743_v41 }
  0xc3   : > { %761 = vst.msk [vmem:[%s1237_s29 + $0x14] sm:$0xf] %vm755_vm3, %v696_v42 }
  0xc4   : > { %777 = vst.msk [vmem:[%s1237_s29 + $0x54] sm:$0xf] %vm755_vm3, %v712_v43  ;;  %v623_v44 = vpop.f32.mrf.mxu2  ;;  %v663_v45 = vpop.f32.mrf.mxu3 }
  0xc5   : > { %v624_v46 = vadd.f32 %v1228_v40, %v623_v44  ;;  %v664_v47 = vadd.f32 %v1228_v40, %v663_v45  ;;  %v546_v48 = vpop.f32.mrf.mxu0  ;;  %v586_v49 = vpop.f32.mrf.mxu1 }
  0xc6   : > { %v547_v50 = vadd.f32 %v1228_v40, %v546_v48  ;;  %v587_v51 = vadd.f32 %v1228_v40, %v586_v49 }
  0xc7   : > { %v728_v52 = vpack.c.bf16 %v624_v46, %v624_v46  ;;  %v744_v53 = vpack.c.bf16 %v664_v47, %v664_v47 }
  0xc8   : > { %v697_v54 = vpack.c.bf16 %v547_v50, %v547_v50  ;;  %v713_v55 = vpack.c.bf16 %v587_v51, %v587_v51 }
  0xc9   : > { %793 = vst.msk [vmem:[%s1237_s29 + $0x94] sm:$0xf] %vm755_vm3, %v728_v52 }
  0xca   : > { %809 = vst.msk [vmem:[%s1237_s29 + $0xd4] sm:$0xf] %vm755_vm3, %v744_v53 }
  0xcb   : > { %762 = vst.msk [vmem:[%s1237_s29 + $0x18] sm:$0xf] %vm755_vm3, %v697_v54 }
  0xcc   : > { %778 = vst.msk [vmem:[%s1237_s29 + $0x58] sm:$0xf] %vm755_vm3, %v713_v55  ;;  %v626_v56 = vpop.f32.mrf.mxu2  ;;  %v666_v57 = vpop.f32.mrf.mxu3 }
  0xcd   : > { %v627_v58 = vadd.f32 %v1228_v40, %v626_v56  ;;  %v667_v59 = vadd.f32 %v1228_v40, %v666_v57  ;;  %v548_v60 = vpop.f32.mrf.mxu0  ;;  %v588_v61 = vpop.f32.mrf.mxu1 }
  0xce   : > { %v549_v62 = vadd.f32 %v1228_v40, %v548_v60  ;;  %v589_v63 = vadd.f32 %v1228_v40, %v588_v61 }
  0xcf   : > { %v729_v0 = vpack.c.bf16 %v627_v58, %v627_v58  ;;  %v745_v1 = vpack.c.bf16 %v667_v59, %v667_v59 }
  0xd0   : > { %v698_v2 = vpack.c.bf16 %v549_v62, %v549_v62  ;;  %v714_v3 = vpack.c.bf16 %v589_v63, %v589_v63 }
  0xd1   : > { %794 = vst.msk [vmem:[%s1237_s29 + $0x98] sm:$0xf] %vm755_vm3, %v729_v0 }
  0xd2   : > { %810 = vst.msk [vmem:[%s1237_s29 + $0xd8] sm:$0xf] %vm755_vm3, %v745_v1 }
  0xd3   : > { %763 = vst.msk [vmem:[%s1237_s29 + $0x1c] sm:$0xf] %vm755_vm3, %v698_v2 }
  0xd4   : > { %779 = vst.msk [vmem:[%s1237_s29 + $0x5c] sm:$0xf] %vm755_vm3, %v714_v3  ;;  %v628_v4 = vpop.f32.mrf.mxu2  ;;  %v668_v5 = vpop.f32.mrf.mxu3 }
  0xd5   : > { %v629_v6 = vadd.f32 %v1228_v40, %v628_v4  ;;  %v669_v7 = vadd.f32 %v1228_v40, %v668_v5  ;;  %v551_v8 = vpop.f32.mrf.mxu0  ;;  %v591_v9 = vpop.f32.mrf.mxu1 }
  0xd6   : > { %v552_v10 = vadd.f32 %v1228_v40, %v551_v8  ;;  %v592_v11 = vadd.f32 %v1228_v40, %v591_v9 }
  0xd7   : > { %v730_v12 = vpack.c.bf16 %v629_v6, %v629_v6  ;;  %v746_v13 = vpack.c.bf16 %v669_v7, %v669_v7 }
  0xd8   : > { %v699_v14 = vpack.c.bf16 %v552_v10, %v552_v10  ;;  %v715_v15 = vpack.c.bf16 %v592_v11, %v592_v11 }
  0xd9   : > { %795 = vst.msk [vmem:[%s1237_s29 + $0x9c] sm:$0xf] %vm755_vm3, %v730_v12 }
  0xda   : > { %811 = vst.msk [vmem:[%s1237_s29 + $0xdc] sm:$0xf] %vm755_vm3, %v746_v13 }
  0xdb   : > { %764 = vst.msk [vmem:[%s1237_s29 + $0x20] sm:$0xf] %vm755_vm3, %v699_v14 }
  0xdc   : > { %780 = vst.msk [vmem:[%s1237_s29 + $0x60] sm:$0xf] %vm755_vm3, %v715_v15  ;;  %v631_v16 = vpop.f32.mrf.mxu2  ;;  %v671_v17 = vpop.f32.mrf.mxu3 }
  0xdd   : > { %v632_v18 = vadd.f32 %v1228_v40, %v631_v16  ;;  %v672_v19 = vadd.f32 %v1228_v40, %v671_v17  ;;  %v553_v20 = vpop.f32.mrf.mxu0  ;;  %v593_v21 = vpop.f32.mrf.mxu1 }
  0xde   : > { %v554_v22 = vadd.f32 %v1228_v40, %v553_v20  ;;  %v594_v23 = vadd.f32 %v1228_v40, %v593_v21 }
  0xdf   : > { %v731_v24 = vpack.c.bf16 %v632_v18, %v632_v18  ;;  %v747_v25 = vpack.c.bf16 %v672_v19, %v672_v19 }
  0xe0   : > { %v700_v26 = vpack.c.bf16 %v554_v22, %v554_v22  ;;  %v716_v27 = vpack.c.bf16 %v594_v23, %v594_v23 }
  0xe1   : > { %796 = vst.msk [vmem:[%s1237_s29 + $0xa0] sm:$0xf] %vm755_vm3, %v731_v24 }
  0xe2   : > { %812 = vst.msk [vmem:[%s1237_s29 + $0xe0] sm:$0xf] %vm755_vm3, %v747_v25 }
  0xe3   : > { %765 = vst.msk [vmem:[%s1237_s29 + $0x24] sm:$0xf] %vm755_vm3, %v700_v26 }
  0xe4   : > { %781 = vst.msk [vmem:[%s1237_s29 + $0x64] sm:$0xf] %vm755_vm3, %v716_v27  ;;  %v633_v28 = vpop.f32.mrf.mxu2  ;;  %v673_v29 = vpop.f32.mrf.mxu3 }
  0xe5   : > { %v634_v30 = vadd.f32 %v1228_v40, %v633_v28  ;;  %v674_v31 = vadd.f32 %v1228_v40, %v673_v29  ;;  %v556_v32 = vpop.f32.mrf.mxu0  ;;  %v596_v33 = vpop.f32.mrf.mxu1 }
  0xe6   : > { %v557_v34 = vadd.f32 %v1228_v40, %v556_v32  ;;  %v597_v35 = vadd.f32 %v1228_v40, %v596_v33 }
  0xe7   : > { %v732_v36 = vpack.c.bf16 %v634_v30, %v634_v30  ;;  %v748_v37 = vpack.c.bf16 %v674_v31, %v674_v31 }
  0xe8   : > { %v701_v38 = vpack.c.bf16 %v557_v34, %v557_v34  ;;  %v717_v39 = vpack.c.bf16 %v597_v35, %v597_v35 }
  0xe9   : > { %797 = vst.msk [vmem:[%s1237_s29 + $0xa4] sm:$0xf] %vm755_vm3, %v732_v36 }
  0xea   : > { %813 = vst.msk [vmem:[%s1237_s29 + $0xe4] sm:$0xf] %vm755_vm3, %v748_v37 }
  0xeb   : > { %766 = vst.msk [vmem:[%s1237_s29 + $0x28] sm:$0xf] %vm755_vm3, %v701_v38 }
  0xec   : > { %782 = vst.msk [vmem:[%s1237_s29 + $0x68] sm:$0xf] %vm755_vm3, %v717_v39  ;;  %v636_v41 = vpop.f32.mrf.mxu2  ;;  %v676_v42 = vpop.f32.mrf.mxu3 }
  0xed   : > { %v637_v43 = vadd.f32 %v1228_v40, %v636_v41  ;;  %v677_v44 = vadd.f32 %v1228_v40, %v676_v42  ;;  %v558_v45 = vpop.f32.mrf.mxu0  ;;  %v598_v46 = vpop.f32.mrf.mxu1 }
  0xee   : > { %v559_v47 = vadd.f32 %v1228_v40, %v558_v45  ;;  %v599_v48 = vadd.f32 %v1228_v40, %v598_v46 }
  0xef   : > { %v733_v49 = vpack.c.bf16 %v637_v43, %v637_v43  ;;  %v749_v50 = vpack.c.bf16 %v677_v44, %v677_v44 }
  0xf0   : > { %v702_v51 = vpack.c.bf16 %v559_v47, %v559_v47  ;;  %v718_v52 = vpack.c.bf16 %v599_v48, %v599_v48 }
  0xf1   : > { %798 = vst.msk [vmem:[%s1237_s29 + $0xa8] sm:$0xf] %vm755_vm3, %v733_v49 }
  0xf2   : > { %814 = vst.msk [vmem:[%s1237_s29 + $0xe8] sm:$0xf] %vm755_vm3, %v749_v50 }
  0xf3   : > { %767 = vst.msk [vmem:[%s1237_s29 + $0x2c] sm:$0xf] %vm755_vm3, %v702_v51 }
  0xf4   : > { %783 = vst.msk [vmem:[%s1237_s29 + $0x6c] sm:$0xf] %vm755_vm3, %v718_v52  ;;  %v638_v53 = vpop.f32.mrf.mxu2  ;;  %v678_v54 = vpop.f32.mrf.mxu3 }
  0xf5   : > { %v639_v55 = vadd.f32 %v1228_v40, %v638_v53  ;;  %v679_v56 = vadd.f32 %v1228_v40, %v678_v54  ;;  %v561_v57 = vpop.f32.mrf.mxu0  ;;  %v601_v58 = vpop.f32.mrf.mxu1 }
  0xf6   : > { %v562_v59 = vadd.f32 %v1228_v40, %v561_v57  ;;  %v602_v60 = vadd.f32 %v1228_v40, %v601_v58 }
  0xf7   : > { %v734_v61 = vpack.c.bf16 %v639_v55, %v639_v55  ;;  %v750_v62 = vpack.c.bf16 %v679_v56, %v679_v56 }
  0xf8   : > { %v703_v63 = vpack.c.bf16 %v562_v59, %v562_v59  ;;  %v719_v0 = vpack.c.bf16 %v602_v60, %v602_v60 }
  0xf9   : > { %799 = vst.msk [vmem:[%s1237_s29 + $0xac] sm:$0xf] %vm755_vm3, %v734_v61 }
  0xfa   : > { %815 = vst.msk [vmem:[%s1237_s29 + $0xec] sm:$0xf] %vm755_vm3, %v750_v62 }
  0xfb   : > { %768 = vst.msk [vmem:[%s1237_s29 + $0x30] sm:$0xf] %vm755_vm3, %v703_v63 }
  0xfc   : > { %784 = vst.msk [vmem:[%s1237_s29 + $0x70] sm:$0xf] %vm755_vm3, %v719_v0  ;;  %v641_v1 = vpop.f32.mrf.mxu2  ;;  %v681_v2 = vpop.f32.mrf.mxu3 }
  0xfd   : > { %v642_v3 = vadd.f32 %v1228_v40, %v641_v1  ;;  %v682_v4 = vadd.f32 %v1228_v40, %v681_v2  ;;  %v563_v5 = vpop.f32.mrf.mxu0  ;;  %v603_v6 = vpop.f32.mrf.mxu1 }
  0xfe   : > { %v564_v7 = vadd.f32 %v1228_v40, %v563_v5  ;;  %v604_v8 = vadd.f32 %v1228_v40, %v603_v6 }
  0xff   : > { %v735_v9 = vpack.c.bf16 %v642_v3, %v642_v3  ;;  %v751_v10 = vpack.c.bf16 %v682_v4, %v682_v4 }
 0x100   : > { %v704_v11 = vpack.c.bf16 %v564_v7, %v564_v7  ;;  %v720_v12 = vpack.c.bf16 %v604_v8, %v604_v8 }
 0x101   : > { %800 = vst.msk [vmem:[%s1237_s29 + $0xb0] sm:$0xf] %vm755_vm3, %v735_v9 }
 0x102   : > { %816 = vst.msk [vmem:[%s1237_s29 + $0xf0] sm:$0xf] %vm755_vm3, %v751_v10 }
 0x103   : > { %769 = vst.msk [vmem:[%s1237_s29 + $0x34] sm:$0xf] %vm755_vm3, %v704_v11 }
 0x104   : > { %785 = vst.msk [vmem:[%s1237_s29 + $0x74] sm:$0xf] %vm755_vm3, %v720_v12  ;;  %v643_v13 = vpop.f32.mrf.mxu2  ;;  %v683_v14 = vpop.f32.mrf.mxu3 }
 0x105   : > { %v644_v15 = vadd.f32 %v1228_v40, %v643_v13  ;;  %v684_v16 = vadd.f32 %v1228_v40, %v683_v14  ;;  %v566_v17 = vpop.f32.mrf.mxu0  ;;  %v606_v18 = vpop.f32.mrf.mxu1 }
 0x106   : > { %v567_v19 = vadd.f32 %v1228_v40, %v566_v17  ;;  %v607_v20 = vadd.f32 %v1228_v40, %v606_v18 }
 0x107   : > { %v736_v21 = vpack.c.bf16 %v644_v15, %v644_v15  ;;  %v752_v22 = vpack.c.bf16 %v684_v16, %v684_v16 }
 0x108   : > { %v705_v23 = vpack.c.bf16 %v567_v19, %v567_v19  ;;  %v721_v24 = vpack.c.bf16 %v607_v20, %v607_v20 }
 0x109   : > { %801 = vst.msk [vmem:[%s1237_s29 + $0xb4] sm:$0xf] %vm755_vm3, %v736_v21 }
 0x10a   : > { %817 = vst.msk [vmem:[%s1237_s29 + $0xf4] sm:$0xf] %vm755_vm3, %v752_v22 }
 0x10b   : > { %770 = vst.msk [vmem:[%s1237_s29 + $0x38] sm:$0xf] %vm755_vm3, %v705_v23 }
 0x10c   : > { %786 = vst.msk [vmem:[%s1237_s29 + $0x78] sm:$0xf] %vm755_vm3, %v721_v24  ;;  %v646_v25 = vpop.f32.mrf.mxu2  ;;  %v686_v26 = vpop.f32.mrf.mxu3 }
 0x10d   : > { %v647_v27 = vadd.f32 %v1228_v40, %v646_v25  ;;  %v687_v28 = vadd.f32 %v1228_v40, %v686_v26  ;;  %v568_v29 = vpop.f32.mrf.mxu0  ;;  %v608_v30 = vpop.f32.mrf.mxu1 }
 0x10e   : > { %v569_v31 = vadd.f32 %v1228_v40, %v568_v29  ;;  %v609_v32 = vadd.f32 %v1228_v40, %v608_v30 }
 0x10f   : > { %v737_v33 = vpack.c.bf16 %v647_v27, %v647_v27  ;;  %v753_v34 = vpack.c.bf16 %v687_v28, %v687_v28 }
 0x110   : > { %v706_v35 = vpack.c.bf16 %v569_v31, %v569_v31  ;;  %v722_v36 = vpack.c.bf16 %v609_v32, %v609_v32 }
 0x111   : > { %802 = vst.msk [vmem:[%s1237_s29 + $0xb8] sm:$0xf] %vm755_vm3, %v737_v33 }
 0x112   : > { %818 = vst.msk [vmem:[%s1237_s29 + $0xf8] sm:$0xf] %vm755_vm3, %v753_v34 }
 0x113   : > { %771 = vst.msk [vmem:[%s1237_s29 + $0x3c] sm:$0xf] %vm755_vm3, %v706_v35 }
 0x114   : > { %787 = vst.msk [vmem:[%s1237_s29 + $0x7c] sm:$0xf] %vm755_vm3, %v722_v36  ;;  %v648_v37 = vpop.f32.mrf.mxu2  ;;  %v688_v38 = vpop.f32.mrf.mxu3 }
 0x115   : > { %v649_v39 = vadd.f32 %v1228_v40, %v648_v37  ;;  %v689_v41 = vadd.f32 %v1228_v40, %v688_v38 }
 0x117   : > { %v738_v42 = vpack.c.bf16 %v649_v39, %v649_v39  ;;  %v754_v43 = vpack.c.bf16 %v689_v41, %v689_v41 }
 0x119   : > { %803 = vst.msk [vmem:[%s1237_s29 + $0xbc] sm:$0xf] %vm755_vm3, %v738_v42 }
 0x11a   : > { %819 = vst.msk [vmem:[%s1237_s29 + $0xfc] sm:$0xf] %vm755_vm3, %v754_v43 }
 0x11b PF: > { %s13_s12 = sadd.s32 1, %s1111_s12  }
 0x11c   : > { %p10_p4 = scmp.ge.s32.totalorder %s13_s12, 18  }
 0x11e   :  { %12 = sbr.rel (!%p10_p4) target bundleno = 1 (0x1), region = 62 }

</bundles_post_ra>
